<compile_context>
chip_gen: v7x
topology: tpu7x:2x2x1
jax: 0.10.0
libtpu: 0.0.40
codegen_flags: <defaults>
</compile_context>

<pallas_src>
import jax
import jax.numpy as jnp
from jax.experimental import pallas as pl
from jax.experimental.pallas import tpu as pltpu


def acmodel_kernel(x_ref, wlogit_ref, blogit_ref, table_ref, out_ref):
    # x block: (tm, H) float32, lane-dense (H = 256 = 2*128 lanes).
    x = x_ref[...]

    # Folded in_proj + (argmax-invariant) normalize + cosine logits.
    logits = jnp.dot(x, wlogit_ref[...],
                     preferred_element_type=jnp.float32) + blogit_ref[...]      # (tm, K)

    # one_hot(argmax(logits)) with torch-style first-max tie-break.
    K = logits.shape[-1]
    iota = jax.lax.broadcasted_iota(jnp.int32, logits.shape, 1)
    lmax = jnp.max(logits, axis=-1, keepdims=True)
    first_idx = jnp.min(jnp.where(logits == lmax, iota, K), axis=-1, keepdims=True)  # (tm, 1)
    one_hot = (iota == first_idx).astype(jnp.float32)                            # (tm, K)

    # Folded codebook -> out_proj -> pointwise conv (+ biases) lookup table.
    out_ref[...] = jnp.dot(one_hot, table_ref[...],
                           preferred_element_type=jnp.float32).astype(out_ref.dtype)


def _choose_row_tile(m, max_tile=2048, min_rows_per_step=512):
    """Single grid step unless M is large enough that each step still carries
    >= min_rows_per_step rows (splitting a tiny kernel only adds ~0.35us/step
    of fixed overhead and the second v7x TensorCore cannot help at that size)."""
    if m <= max_tile:
        return m
    cands = [t for t in range(min_rows_per_step, max_tile + 1, 8) if m % t == 0]
    return max(cands) if cands else m


def acmodel_forward(h, w_in, b_in, codebook, w_out, b_out, w_conv, b_conv):
    B, H, T = h.shape
    K = codebook.shape[0]
    M = B * T
    f32 = jnp.float32

    # Lane-dense, time-major activation slab: (B, H, T) -> (B*T, H).
    x = jnp.swapaxes(h, 1, 2).reshape(M, H).astype(f32)

    w_in = jnp.asarray(w_in, f32)
    b_in = jnp.asarray(b_in, f32)
    cb = jnp.asarray(codebook, f32)
    w_out = jnp.asarray(w_out, f32)
    b_out = jnp.asarray(b_out, f32)
    w_conv = jnp.asarray(w_conv, f32)
    b_conv = jnp.asarray(b_conv, f32)

    # codebook1_norm as in __init__ (F.normalize default eps=1e-12).
    cb_norm = cb / jnp.maximum(jnp.linalg.norm(cb, axis=-1, keepdims=True), 1e-12)

    # Fold 1: logits = x @ w_logit + b_logit  (L2-normalize dropped: argmax-invariant).
    w_logit = w_in.T @ cb_norm.T                      # (H, K)
    b_logit = (b_in @ cb_norm.T).reshape(1, K)        # (1, K)

    # Fold 2: per-code output table = conv(out_proj(codebook[k])) for each code k.
    # TODO(synk): this conv fold is exact only for the modeled pointwise Conv1d(H,H,1);
    #             keep the conv as a separate in-kernel matmul if the real submodule
    #             is not a per-timestep linear map.
    table = cb @ w_out.T + b_out[None, :]             # (K, H)  == out_proj(codebook)
    table = table @ w_conv.T + b_conv[None, :]        # (K, H)  pointwise-conv folded in

    tm = _choose_row_tile(M)
    grid = (M // tm,)

    out_flat = pl.pallas_call(
        acmodel_kernel,
        out_shape=jax.ShapeDtypeStruct((M, H), f32),
        grid=grid,
        in_specs=[
            pl.BlockSpec((tm, H), lambda m: (m, 0)),   # activation row-tile
            pl.BlockSpec((H, K), lambda m: (0, 0)),    # folded logits weight
            pl.BlockSpec((1, K), lambda m: (0, 0)),    # folded logits bias
            pl.BlockSpec((K, H), lambda m: (0, 0)),    # folded code -> output table
        ],
        out_specs=pl.BlockSpec((tm, H), lambda m: (m, 0)),
        compiler_params=pltpu.CompilerParams(dimension_semantics=("parallel",)),
    )(x, w_logit, b_logit, table)

    # Back to the module's channels-first layout.
    return jnp.swapaxes(out_flat.reshape(B, T, H), 1, 2)


if __name__ == "__main__":
    key = jax.random.PRNGKey(0)
    B, H, T = 2, 256, 16     # d_model = 256 path; conversion submodule channels == H
    Dc, K = 8, 16            # quantizer codebook dim, number of codes

    ks = jax.random.split(key, 8)
    h        = jax.random.normal(ks[0], (B, H, T), jnp.float32)
    w_in     = jax.random.normal(ks[1], (Dc, H), jnp.float32) * 0.05
    b_in     = jax.random.normal(ks[2], (Dc,),   jnp.float32) * 0.05
    codebook = jax.random.normal(ks[3], (K, Dc), jnp.float32)
    w_out    = jax.random.normal(ks[4], (H, Dc), jnp.float32) * 0.05
    b_out    = jax.random.normal(ks[5], (H,),   jnp.float32) * 0.05
    w_conv   = jax.random.normal(ks[6], (H, H), jnp.float32) * 0.05
    b_conv   = jax.random.normal(ks[7], (H,),   jnp.float32) * 0.05

    out = acmodel_forward(h, w_in, b_in, codebook, w_out, b_out, w_conv, b_conv)
    out = jax.block_until_ready(out)

    # Pure-JAX f32 reference, faithful to the PyTorch forward (no precision tweaks).
    def ref(hh):
        x = jnp.swapaxes(hh, 1, 2)                                     # b t d
        e = x @ w_in.T + b_in
        e = e / jnp.maximum(jnp.linalg.norm(e, axis=-1, keepdims=True), 1e-8)
        cbn = codebook / jnp.maximum(
            jnp.linalg.norm(codebook, axis=-1, keepdims=True), 1e-12)
        probs = jax.nn.softmax(e @ cbn.T, axis=-1)
        oh = jax.nn.one_hot(jnp.argmax(probs, -1), K, dtype=probs.dtype)
        fp = (oh - probs) + probs                                      # forward == oh
        z = (fp @ codebook) @ w_out.T + b_out                          # b t H
        z = jnp.swapaxes(z, 1, 2)                                      # b H t
        # conversion submodule modeled as pointwise Conv1d(H, H, 1), f32
        return jnp.einsum('oh,bht->bot', w_conv, z) + b_conv[None, :, None]

    r = ref(h)
    assert out.shape == (B, H, T)
    assert jnp.allclose(out, r, rtol=1e-3, atol=1e-3), float(jnp.max(jnp.abs(out - r)))
    print("KERNEL_OK")
</pallas_src>

<mosaic_0001>
module attributes {stable_mosaic.version = 11 : i64} {
  func.func @acmodel_kernel(%arg0: i32, %arg1: memref<32x256xf32, #tpu.memory_space<vmem>>, %arg2: memref<256x16xf32, #tpu.memory_space<vmem>>, %arg3: memref<1x16xf32, #tpu.memory_space<vmem>>, %arg4: memref<16x256xf32, #tpu.memory_space<vmem>>, %arg5: memref<32x256xf32, #tpu.memory_space<vmem>>) attributes {dimension_semantics = [#tpu.dimension_semantics<parallel>], iteration_bounds = array<i64: 1>, scalar_prefetch = 0 : i64, scratch_operands = 0 : i64, tpu.core_type = #tpu.core_type<tc>, window_params = [{transform_indices = @transform_0, window_bounds = array<i64: 32, 256>}, {pipeline_mode = #tpu.pipeline_mode<synchronous>, transform_indices = @transform_1, window_bounds = array<i64: 256, 16>}, {pipeline_mode = #tpu.pipeline_mode<synchronous>, transform_indices = @transform_2, window_bounds = array<i64: 1, 16>}, {pipeline_mode = #tpu.pipeline_mode<synchronous>, transform_indices = @transform_3, window_bounds = array<i64: 16, 256>}, {transform_indices = @transform_4, window_bounds = array<i64: 32, 256>}]} {
    %c0 = arith.constant 0 : index
    %c0_0 = arith.constant 0 : index
    %0 = vector.load %arg1[%c0, %c0_0] : memref<32x256xf32, #tpu.memory_space<vmem>>, vector<32x256xf32>
    %c0_1 = arith.constant 0 : index
    %c0_2 = arith.constant 0 : index
    %1 = vector.load %arg2[%c0_1, %c0_2] : memref<256x16xf32, #tpu.memory_space<vmem>>, vector<256x16xf32>
    %cst = arith.constant dense<0.000000e+00> : vector<32x16xf32>
    %2 = tpu.matmul %0, %1, %cst {dimension_numbers = #tpu.dot_dimension_numbers<[1], [0], [0], [1], [0, 0, 1, 1], [], []>} : vector<32x256xf32>, vector<256x16xf32>, vector<32x16xf32> -> vector<32x16xf32>
    %c0_3 = arith.constant 0 : index
    %c0_4 = arith.constant 0 : index
    %3 = vector.load %arg3[%c0_3, %c0_4] : memref<1x16xf32, #tpu.memory_space<vmem>>, vector<1x16xf32>
    %4 = vector.broadcast %3 : vector<1x16xf32> to vector<32x16xf32>
    %5 = arith.addf %2, %4 : vector<32x16xf32>
    %6 = tpu.iota {dimensions = array<i32: 1>} : vector<32x16xi32>
    %cst_5 = arith.constant dense<0xFF800000> : vector<32xf32>
    %7 = vector.multi_reduction <maximumf>, %5, %cst_5 [1] : vector<32x16xf32> to vector<32xf32>
    %8 = vector.shape_cast %7 : vector<32xf32> to vector<32x1xf32>
    %9 = vector.broadcast %8 : vector<32x1xf32> to vector<32x16xf32>
    %10 = arith.cmpf oeq, %5, %9 : vector<32x16xf32>
    %c16_i32 = arith.constant 16 : i32
    %11 = vector.broadcast %c16_i32 : i32 to vector<32x16xi32>
    %12 = arith.select %10, %6, %11 : vector<32x16xi1>, vector<32x16xi32>
    %cst_6 = arith.constant dense<2147483647> : vector<32xi32>
    %13 = vector.multi_reduction <minsi>, %12, %cst_6 [1] : vector<32x16xi32> to vector<32xi32>
    %14 = vector.shape_cast %13 : vector<32xi32> to vector<32x1xi32>
    %15 = vector.broadcast %14 : vector<32x1xi32> to vector<32x16xi32>
    %16 = arith.cmpi eq, %6, %15 : vector<32x16xi32>
    %17 = arith.extui %16 : vector<32x16xi1> to vector<32x16xi32>
    %18 = arith.sitofp %17 : vector<32x16xi32> to vector<32x16xf32>
    %c0_7 = arith.constant 0 : index
    %c0_8 = arith.constant 0 : index
    %19 = vector.load %arg4[%c0_7, %c0_8] : memref<16x256xf32, #tpu.memory_space<vmem>>, vector<16x256xf32>
    %cst_9 = arith.constant dense<0.000000e+00> : vector<32x256xf32>
    %20 = tpu.matmul %18, %19, %cst_9 {dimension_numbers = #tpu.dot_dimension_numbers<[1], [0], [0], [1], [0, 0, 1, 1], [], []>} : vector<32x16xf32>, vector<16x256xf32>, vector<32x256xf32> -> vector<32x256xf32>
    %c0_10 = arith.constant 0 : index
    %c0_11 = arith.constant 0 : index
    %21 = vector.load %arg5[%c0_10, %c0_11] : memref<32x256xf32, #tpu.memory_space<vmem>>, vector<32x256xf32>
    tpu.vector_store %arg5[%c0_10, %c0_11], %20 {strides = array<i32>} : memref<32x256xf32, #tpu.memory_space<vmem>>, vector<32x256xf32>,
    return
  }
  func.func @transform_0(%arg0: i32) -> (i32, i32) {
    %c0_i32 = arith.constant 0 : i32
    %c0_i32_0 = arith.constant 0 : i32
    return %arg0, %c0_i32 : i32, i32
  }
  func.func @transform_1(%arg0: i32) -> (i32, i32) {
    %c0_i32 = arith.constant 0 : i32
    %c0_i32_0 = arith.constant 0 : i32
    %c0_i32_1 = arith.constant 0 : i32
    return %c0_i32, %c0_i32_0 : i32, i32
  }
  func.func @transform_2(%arg0: i32) -> (i32, i32) {
    %c0_i32 = arith.constant 0 : i32
    %c0_i32_0 = arith.constant 0 : i32
    %c0_i32_1 = arith.constant 0 : i32
    return %c0_i32, %c0_i32_0 : i32, i32
  }
  func.func @transform_3(%arg0: i32) -> (i32, i32) {
    %c0_i32 = arith.constant 0 : i32
    %c0_i32_0 = arith.constant 0 : i32
    %c0_i32_1 = arith.constant 0 : i32
    return %c0_i32, %c0_i32_0 : i32, i32
  }
  func.func @transform_4(%arg0: i32) -> (i32, i32) {
    %c0_i32 = arith.constant 0 : i32
    %c0_i32_0 = arith.constant 0 : i32
    return %arg0, %c0_i32 : i32, i32
  }
}

</mosaic_0001>

<bundles_post_ra>
// kernel: tpu_custom_call.1
= control target key start
LH: loop header
LB: loop body
LE: loop exit
PB: predicated region body
PF: predicated region fallthrough
CT: control target
= control target key end

     0   :  { %s689_s0 = inlined_call_operand.vmem [shape: f32[32,256], index: 0, kind: input, shape index: {}]   ;;  %s690_s1 = inlined_call_operand.vmem [shape: f32[256,16], index: 1, kind: input, shape index: {}]   ;;  %s691_s2 = inlined_call_operand.vmem [shape: f32[1,16], index: 2, kind: input, shape index: {}]   ;;  %s692_s3 = inlined_call_operand.vmem [shape: f32[16,256], index: 3, kind: input, shape index: {}]   ;;  %s693_s4 = inlined_call_operand.hbm [shape: f32[32,256], index: 4, kind: output, shape index: {}]  }
   0x1   :  { %v42_v0 = vld [vmem:[%s690_s1 + $0x80] sm:$0xff]  ;;  %v43_v1 = vld [vmem:[%s690_s1 + $0x88] sm:$0xff]  ;;  %v44_v5 = vld [vmem:[%s690_s1 + $0x90] sm:$0xff] }
   0x2   :  { %v26_v2 = vld [vmem:[%s690_s1] sm:$0xff]  ;;  %v427_v3 = vpack.c.bf16 %v43_v1, %v42_v0  ;;  %v27_v4 = vld [vmem:[%s690_s1 + $0x8] sm:$0xff]  ;;  %v45_v6 = vld [vmem:[%s690_s1 + $0x98] sm:$0xff] }
   0x3   :  { %v429_v7 = vpack.c.bf16 %v27_v4, %v26_v2  ;;  %v431_v8 = vpack.c.bf16 %v45_v6, %v44_v5  ;;  %v28_v9 = vld [vmem:[%s690_s1 + $0x10] sm:$0xff]  ;;  %v29_v10 = vld [vmem:[%s690_s1 + $0x18] sm:$0xff]  ;;  %v46_v11 = vld [vmem:[%s690_s1 + $0xa0] sm:$0xff] }
   0x4   :  { %428 = vmatprep.subr.bf16.mxu0 %v427_v3  ;;  %v47_v12 = vld [vmem:[%s690_s1 + $0xa8] sm:$0xff]  ;;  %v433_v13 = vpack.c.bf16 %v29_v10, %v28_v9  ;;  %v30_v15 = vld [vmem:[%s690_s1 + $0x20] sm:$0xff]  ;;  %v48_v17 = vld [vmem:[%s690_s1 + $0xb0] sm:$0xff] }
   0x5   :  { %430 = vmatpush3.bf16.msra.mxu0 %v429_v7  ;;  %v435_v14 = vpack.c.bf16 %v47_v12, %v46_v11  ;;  %v31_v16 = vld [vmem:[%s690_s1 + $0x28] sm:$0xff]  ;;  %v49_v18 = vld [vmem:[%s690_s1 + $0xb8] sm:$0xff]  ;;  %v32_v21 = vld [vmem:[%s690_s1 + $0x30] sm:$0xff] }
   0x6   :  { %432 = vmatprep.subr.bf16.mxu0 %v431_v8  ;;  %v437_v19 = vpack.c.bf16 %v31_v16, %v30_v15  ;;  %v439_v20 = vpack.c.bf16 %v49_v18, %v48_v17  ;;  %v33_v22 = vld [vmem:[%s690_s1 + $0x38] sm:$0xff]  ;;  %v50_v23 = vld [vmem:[%s690_s1 + $0xc0] sm:$0xff]  ;;  %v51_v24 = vld [vmem:[%s690_s1 + $0xc8] sm:$0xff] }
   0x7   :  { %v19_v25 = vld [vmem:[%s689_s0 + $0x8] sm:$0xff]  ;;  %v441_v26 = vpack.c.bf16 %v33_v22, %v32_v21  ;;  %v443_v27 = vpack.c.bf16 %v51_v24, %v50_v23  ;;  %v34_v28 = vld [vmem:[%s690_s1 + $0x40] sm:$0xff] }
   0x8   :  { %129 = vmatprep.mubr.f32.mxu0 %v19_v25  ;;  %v35_v29 = vld [vmem:[%s690_s1 + $0x48] sm:$0xff] }
   0x9   :  { %434 = vmatpush3.bf16.msra.mxu0 %v433_v13 }
   0xa   :  { %436 = vmatprep.subr.bf16.mxu0 %v435_v14 }
   0xd   :  { %438 = vmatpush3.bf16.msra.mxu0 %v437_v19 }
   0xe   :  { %440 = vmatprep.subr.bf16.mxu0 %v439_v20 }
   0xf   :  { %9 = vsyncpa [#allocation3], 0  ;;  %v52_v30 = vld [vmem:[%s690_s1 + $0xd0] sm:$0xff]  ;;  %v53_v31 = vld [vmem:[%s690_s1 + $0xd8] sm:$0xff]  ;;  %v445_v32 = vpack.c.bf16 %v35_v29, %v34_v28  ;;  %vm152_vm0 = vcmask 130048   ;;  %v150_v13 = vlaneseq }
  0x10   :  { %v447_v33 = vpack.c.bf16 %v53_v31, %v52_v30  ;;  %v36_v34 = vld [vmem:[%s690_s1 + $0x50] sm:$0xff]  ;;  %v37_v35 = vld [vmem:[%s690_s1 + $0x58] sm:$0xff]  ;;  %v54_v36 = vld [vmem:[%s690_s1 + $0xe0] sm:$0xff] }
  0x11   :  { %442 = vmatpush3.bf16.msra.mxu0 %v441_v26  ;;  %v55_v37 = vld [vmem:[%s690_s1 + $0xe8] sm:$0xff]  ;;  %v449_v38 = vpack.c.bf16 %v37_v35, %v36_v34  ;;  %v38_v40 = vld [vmem:[%s690_s1 + $0x60] sm:$0xff]  ;;  %v56_v42 = vld [vmem:[%s690_s1 + $0xf0] sm:$0xff]  ;;  %v647_v14 = vand.u32 127, %v150_v13 }
  0x12   :  { %444 = vmatprep.subr.bf16.mxu0 %v443_v27  ;;  %v451_v39 = vpack.c.bf16 %v55_v37, %v54_v36  ;;  %v39_v41 = vld [vmem:[%s690_s1 + $0x68] sm:$0xff]  ;;  %v57_v43 = vld [vmem:[%s690_s1 + $0xf8] sm:$0xff]  ;;  %v40_v46 = vld [vmem:[%s690_s1 + $0x70] sm:$0xff] }
  0x13   :  { %v453_v44 = vpack.c.bf16 %v39_v41, %v38_v40  ;;  %v455_v45 = vpack.c.bf16 %v57_v43, %v56_v42  ;;  %v41_v47 = vld [vmem:[%s690_s1 + $0x78] sm:$0xff]  ;;  %v18_v49 = vld [vmem:[%s689_s0] sm:$0xff]  ;;  %v20_v51 = vld [vmem:[%s689_s0 + $0x10] sm:$0xff] }
  0x14   :  { %v457_v48 = vpack.c.bf16 %v41_v47, %v40_v46  ;;  %v21_v50 = vld [vmem:[%s689_s0 + $0x18] sm:$0xff]  ;;  %v23_v52 = vld [vmem:[%s689_s0 + $0x28] sm:$0xff]  ;;  %v22_v53 = vld [vmem:[%s689_s0 + $0x20] sm:$0xff] }
  0x15   :  { %446 = vmatpush3.bf16.msra.mxu0 %v445_v32  ;;  %v25_v54 = vld [vmem:[%s689_s0 + $0x38] sm:$0xff]  ;;  %v24_v55 = vld [vmem:[%s689_s0 + $0x30] sm:$0xff]  ;;  %v374_v58 = vld [vmem:[%s691_s2] ss:$0 sm:$0xff] }
  0x16   :  { %448 = vmatprep.subr.bf16.mxu0 %v447_v33 }
  0x19   :  { %450 = vmatpush3.bf16.msra.mxu0 %v449_v38 }
  0x1a   :  { %452 = vmatprep.subr.bf16.mxu0 %v451_v39 }
  0x1d   :  { %454 = vmatpush3.bf16.msra.mxu0 %v453_v44 }
  0x1e   :  { %456 = vmatprep.subr.bf16.mxu0 %v455_v45 }
  0x21   :  { %458 = vmatpush3.bf16.msra.mxu0 %v457_v48 }
  0x24   :  { %130 = vmatmul.mubr.f32.vlgmr.msra.gmra.mrb[0].mxu0 %v18_v49 }
  0x25   :  { %134 = vmatprep.mubr.f32.mxu0 %v21_v50 }
  0x28   :  { %135 = vmatmul.mubr.f32.gmra.mrb[2].mxu0 %v20_v51  ;;  %v246_v51 = vld [vmem:[%s692_s3 + $0x8] sm:$0xff] }
  0x29   :  { %139 = vmatprep.mubr.f32.mxu0 %v23_v52  ;;  %v248_v52 = vld [vmem:[%s692_s3 + $0x18] sm:$0xff] }
  0x2c   :  { %140 = vmatmul.mubr.f32.gmra.mrb[4].mxu0 %v22_v53  ;;  %v459_v53 = vpack.c.bf16 %v248_v52, %v246_v51 }
  0x2d   :  { %144 = vmatprep.mubr.f32.mxu0 %v25_v54  ;;  %v245_v54 = vld [vmem:[%s692_s3] sm:$0xff] }
  0x2e   :  { %460 = vmatprep.subr.bf16.mxu1 %v459_v53 }
  0x30   :  { %145 = vmatmul.mubr.f32.gmra.mrb[6].mxu0 %v24_v55  ;;  %v247_v55 = vld [vmem:[%s692_s3 + $0x10] sm:$0xff]  ;;  %s492_s3 = smov [#allocation2]  }
  0x31   :  { %s363_s24 = sshll.u32 %s492_s3, 4  ;;  %s364_s24 = int_to_ptr.vmem [resolvable:$true] %s363_s24 }
  0x32   :  { %s467_s25 = scalar_lea.vmem %s364_s24, 1024  ;;  %p472_p1 = scmp.lt.s32.totalorder %s364_s24, %s364_s24 }
  0x33   :  { %p468_p0 = scmp.ne.s32.totalorder %s364_s24, %s467_s25  ;;  %p473_p2 = scmp.lt.s32.totalorder %s467_s25, %s467_s25 }
  0x35   :  { %p474_p3 = por %p473_p2, %p472_p1 }
  0x37   :  { %p475_p4 = pnand %p474_p3, %p468_p0 }
  0xf7   :  { %v415_v56 = vpop.f32.mrb[0].mxu0 }
  0xf8   :  { %v416_v57 = vpop.f32.mrb[1].mxu0 }
  0xf9   :  { %v417_v59 = vadd.f32 %v416_v57, %v415_v56  ;;  %v461_v56 = vpack.c.bf16 %v247_v55, %v245_v54  ;;  %v491_v57 = vmov 0.0  }
  0xfa   :  { %325 = vmatprep.mubr.f32.mxu1 %v491_v57 }
  0xfb   :  { %v418_v60 = vpop.f32.mrb[2].mxu0  ;;  %v132_v61 = vadd.f32 %v417_v59, %v374_v58  ;;  %462 = vmatpush1.bf16.msra.mxu1 %v461_v56 }
  0xfc   :  { %v419_v62 = vpop.f32.mrb[3].mxu0 }
  0xfd   :  { %v420_v63 = vadd.f32 %v419_v62, %v418_v60  ;;  %v153_v0 = vsel %vm152_vm0, %v132_v61, -inf }
  0xfe   :  { %154 = vmax.xlane.f32.xlu0 %v153_v0 }
  0xff   :  { %v421_v1 = vpop.f32.mrb[4].mxu0  ;;  %v137_v2 = vadd.f32 %v420_v63, %v374_v58 }
 0x100   :  { %v422_v3 = vpop.f32.mrb[5].mxu0 }
 0x101   :  { %v423_v4 = vadd.f32 %v422_v3, %v421_v1  ;;  %v156_v5 = vsel %vm152_vm0, %v137_v2, -inf }
 0x102   :  { %157 = vmax.xlane.f32.xlu0 %v156_v5 }
 0x103   :  { %v424_v6 = vpop.f32.mrb[6].mxu0  ;;  %v142_v7 = vadd.f32 %v423_v4, %v374_v58 }
 0x104   :  { %v425_v8 = vpop.f32.mrb[7].mxu0 }
 0x105   :  { %v426_v9 = vadd.f32 %v425_v8, %v424_v6  ;;  %v159_v10 = vsel %vm152_vm0, %v142_v7, -inf }
 0x106   :  { %160 = vmax.xlane.f32.xlu1 %v159_v10 }
 0x107   :  { %v147_v11 = vadd.f32 %v426_v9, %v374_v58 }
 0x109   :  { %v162_v12 = vsel %vm152_vm0, %v147_v11, -inf }
 0x10a   :  { %163 = vmax.xlane.f32.xlu1 %v162_v12 }
 0x18b   :  { %v155_v15 = vpop.xlane.xlu0 %154 }
 0x18c   :  { %vm165_vm1 = vcmp.eq.f32.partialorder %v132_v61, %v155_v15 }
 0x18d   :  { %v169_v16 = vsel %vm165_vm1, %v647_v14, 16 }
 0x18e   :  { %v173_v17 = vsel %vm152_vm0, %v169_v16, 2147483647 }
 0x18f   :  { %v158_v18 = vpop.xlane.xlu0 %157  ;;  %v175_v19 = vshra.s32 %v173_v17, 16  ;;  %v174_v35 = vand.u32 65535, %v173_v17 }
 0x190   :  { %vm166_vm2 = vcmp.eq.f32.partialorder %v137_v2, %v158_v18 }
 0x191   :  { %v170_v20 = vsel %vm166_vm2, %v647_v14, 16  ;;  %v177_v21 = vcvt.s32.f32 %v175_v19  ;;  %v176_v37 = vcvt.s32.f32 %v174_v35 }
 0x192   :  { %v188_v22 = vsel %vm152_vm0, %v170_v20, 2147483647 }
 0x193   :  { %v161_v23 = vpop.xlane.xlu1 %160  ;;  %178 = vmin.xlane.f32.xlu0 %v177_v21  ;;  %v190_v24 = vshra.s32 %v188_v22, 16  ;;  %v189_v38 = vand.u32 65535, %v188_v22 }
 0x194   :  { %vm167_vm3 = vcmp.eq.f32.partialorder %v142_v7, %v161_v23 }
 0x195   :  { %v171_v25 = vsel %vm167_vm3, %v647_v14, 16  ;;  %v192_v26 = vcvt.s32.f32 %v190_v24  ;;  %v191_v41 = vcvt.s32.f32 %v189_v38 }
 0x196   :  { %v203_v27 = vsel %vm152_vm0, %v171_v25, 2147483647 }
 0x197   :  { %v164_v28 = vpop.xlane.xlu1 %163  ;;  %193 = vmin.xlane.f32.xlu1 %v192_v26  ;;  %v205_v29 = vshra.s32 %v203_v27, 16  ;;  %v204_v42 = vand.u32 65535, %v203_v27 }
 0x198   :  { %vm168_vm4 = vcmp.eq.f32.partialorder %v147_v11, %v164_v28 }
 0x199   :  { %v172_v30 = vsel %vm168_vm4, %v647_v14, 16  ;;  %v207_v31 = vcvt.s32.f32 %v205_v29  ;;  %v206_v45 = vcvt.s32.f32 %v204_v42 }
 0x19a   :  { %v218_v32 = vsel %vm152_vm0, %v172_v30, 2147483647 }
 0x19b   :  { %208 = vmin.xlane.f32.xlu0 %v207_v31  ;;  %v220_v33 = vshra.s32 %v218_v32, 16  ;;  %v219_v46 = vand.u32 65535, %v218_v32 }
 0x19d   :  { %v222_v34 = vcvt.s32.f32 %v220_v33  ;;  %v221_v49 = vcvt.s32.f32 %v219_v46 }
 0x19f   :  { %223 = vmin.xlane.f32.xlu1 %v222_v34 }
 0x220   :  { %v179_v36 = vpop.xlane.xlu0 %178 }
 0x221   :  { %vm180_vm5 = vcmp.eq.f32.partialorder %v177_v21, %v179_v36  ;;  %v185_v58 = vcvt.f32.s32 %v179_v36 }
 0x222   :  { %v181_v39 = vsel %vm180_vm5, %v176_v37, inf }
 0x223   :  { %182 = vmin.xlane.f32.xlu0 %v181_v39  ;;  %v186_v60 = vshll.u32 %v185_v58, 16 }
 0x224   :  { %v194_v40 = vpop.xlane.xlu1 %193 }
 0x225   :  { %vm195_vm6 = vcmp.eq.f32.partialorder %v192_v26, %v194_v40  ;;  %v200_v61 = vcvt.f32.s32 %v194_v40 }
 0x226   :  { %v196_v43 = vsel %vm195_vm6, %v191_v41, inf }
 0x227   :  { %197 = vmin.xlane.f32.xlu1 %v196_v43  ;;  %v201_v1 = vshll.u32 %v200_v61, 16 }
 0x228   :  { %v209_v44 = vpop.xlane.xlu0 %208 }
 0x229   :  { %vm210_vm7 = vcmp.eq.f32.partialorder %v207_v31, %v209_v44  ;;  %v215_v2 = vcvt.f32.s32 %v209_v44 }
 0x22a   :  { %v211_v47 = vsel %vm210_vm7, %v206_v45, inf }
 0x22b   :  { %212 = vmin.xlane.f32.xlu0 %v211_v47  ;;  %v216_v7 = vshll.u32 %v215_v2, 16 }
 0x22c   :  { %v224_v48 = vpop.xlane.xlu1 %223 }
 0x22d   :  { %vm225_vm8 = vcmp.eq.f32.partialorder %v222_v34, %v224_v48  ;;  %v230_v8 = vcvt.f32.s32 %v224_v48 }
 0x22e   :  { %v226_v50 = vsel %vm225_vm8, %v221_v49, inf }
 0x22f   :  { %227 = vmin.xlane.f32.xlu1 %v226_v50  ;;  %v231_v13 = vshll.u32 %v230_v8, 16 }
 0x2b0   :  { %v183_v59 = vpop.xlane.xlu0 %182 }
 0x2b1   :  { %v184_v62 = vcvt.f32.s32 %v183_v59 }
 0x2b3   :  { %v187_v63 = vadd.s32 %v186_v60, %v184_v62 }
 0x2b4   :  { %v198_v0 = vpop.xlane.xlu1 %197 }
 0x2b5   :  { %v199_v3 = vcvt.f32.s32 %v198_v0  ;;  %vm233_vm9 = vcmp.eq.s32.totalorder %v647_v14, %v187_v63 }
 0x2b6   :  { %v375_v4 = vsel %vm233_vm9, 1.0, %v491_v57 }
 0x2b7   :  { %v202_v5 = vadd.s32 %v201_v1, %v199_v3  ;;  %379 = vmatmul.mubr.msk.f32.vlgmr.msra.gmra.mrb[0].mxu1 %vm152_vm0, %v375_v4 }
 0x2b8   :  { %v213_v6 = vpop.xlane.xlu0 %212  ;;  %331 = vmatprep.mubr.f32.mxu1 %v491_v57 }
 0x2b9   :  { %v214_v9 = vcvt.f32.s32 %v213_v6  ;;  %vm234_vm10 = vcmp.eq.s32.totalorder %v647_v14, %v202_v5 }
 0x2ba   :  { %v376_v10 = vsel %vm234_vm10, 1.0, %v491_v57 }
 0x2bb   :  { %v217_v11 = vadd.s32 %v216_v7, %v214_v9  ;;  %380 = vmatmul.mubr.msk.f32.gmra.mrb[2].mxu1 %vm152_vm0, %v376_v10 }
 0x2bc   :  { %v228_v12 = vpop.xlane.xlu1 %227  ;;  %337 = vmatprep.mubr.f32.mxu1 %v491_v57 }
 0x2bd   :  { %vm235_vm11 = vcmp.eq.s32.totalorder %v647_v14, %v217_v11  ;;  %v229_v15 = vcvt.f32.s32 %v228_v12 }
 0x2be   :  { %v377_v16 = vsel %vm235_vm11, 1.0, %v491_v57 }
 0x2bf   :  { %v232_v17 = vadd.s32 %v231_v13, %v229_v15  ;;  %381 = vmatmul.mubr.msk.f32.gmra.mrb[4].mxu1 %vm152_vm0, %v377_v16 }
 0x2c0   :  { %343 = vmatprep.mubr.f32.mxu1 %v491_v57 }
 0x2c1   :  { %vm236_vm12 = vcmp.eq.s32.totalorder %v647_v14, %v232_v17 }
 0x2c2   :  { %v378_v18 = vsel %vm236_vm12, 1.0, %v491_v57 }
 0x2c3   :  { %382 = vmatmul.mubr.msk.f32.gmra.mrb[6].mxu1 %vm152_vm0, %v378_v18 }
 0x38a   :  { %v327_v19 = vpop.f32.mrb[0].mxu1 }
 0x38b   :  { %350 = vst [vmem:[#allocation2] sm:$0xff] %v327_v19  ;;  %v329_v20 = vpop.f32.mrb[1].mxu1 }
 0x38c   :  { %351 = vst [vmem:[#allocation2 + $0x8] sm:$0xff] %v329_v20 }
 0x38e   :  { %v333_v21 = vpop.f32.mrb[2].mxu1 }
 0x38f   :  { %352 = vst [vmem:[#allocation2 + $0x10] sm:$0xff] %v333_v21  ;;  %v335_v22 = vpop.f32.mrb[3].mxu1 }
 0x390   :  { %353 = vst [vmem:[#allocation2 + $0x18] sm:$0xff] %v335_v22 }
 0x392   :  { %v339_v23 = vpop.f32.mrb[4].mxu1 }
 0x393   :  { %354 = vst [vmem:[#allocation2 + $0x20] sm:$0xff] %v339_v23  ;;  %v341_v24 = vpop.f32.mrb[5].mxu1 }
 0x394   :  { %355 = vst [vmem:[#allocation2 + $0x28] sm:$0xff] %v341_v24 }
 0x396   :  { %v345_v25 = vpop.f32.mrb[6].mxu1 }
 0x397   :  { %356 = vst [vmem:[#allocation2 + $0x30] sm:$0xff] %v345_v25  ;;  %v347_v14 = vpop.f32.mrb[7].mxu1 }
 0x398   :  { %357 = vst [vmem:[#allocation2 + $0x38] sm:$0xff] %v347_v14 }
 0x399   :  { %478 = shalt.err (!%p475_p4)
}
 0x39a   :  { %s479_s28 = scalar_lea.hbm %s693_s4, 1024 }
 0x39b   :  { %p480_p5 = scmp.ne.s32.totalorder %s693_s4, %s479_s28  ;;  %p483_p6 = scmp.lt.u32.totalorder %s479_s28, %s693_s4 }
 0x39d   :  { %p485_p7 = pnand %p483_p6, %p480_p5 }
 0x39f   :  { %488 = shalt.err (!%p485_p7)
}
 0x3a0   :  { %s493_s7 = smov 256   ;;  %s494_s8 = smov 16  }
 0x3a1   :  { %369 = dma.vmem_to_hbm [thread:$0]  %s364_s24, 1024, %s693_s4, [#allocation3], %s493_s7, %s493_s7, %s494_s8  }
 0x3a2   :  { %489 = dma.done.wait [#allocation3], 1024  }
 0x3a3   :  { %490 = vsyncadd [#allocation3], 4294966272 }
 0x3a4   :  { %373 = vsyncpa [#allocation3], 1 }

</bundles_post_ra>
